<compile_context>
chip_gen: v7x
topology: tpu7x:2x2x1
jax: 0.10.0
libtpu: 0.0.40
codegen_flags: <defaults>
</compile_context>

<pallas_src>
import functools

import jax
import jax.numpy as jnp
from jax import lax
from jax.experimental import pallas as pl
from jax.experimental.pallas import tpu as pltpu


def _invariant_spec(block_shape):
    """BlockSpec for a grid-invariant input: constant index_map + single buffering."""
    index_map = lambda i: (0,) * len(block_shape)
    try:
        return pl.BlockSpec(block_shape, index_map, pipeline_mode=pl.Buffered(1))
    except TypeError:  # older jax without BlockSpec(pipeline_mode=...): default double-buffer
        return pl.BlockSpec(block_shape, index_map)


# ------------------------------------------------------------------------------------------
# Kernel 1: MLLinear projection head (Linear -> ReLU -> Linear), fused with L2 normalization
# ------------------------------------------------------------------------------------------
def projection_head_kernel(x_ref, w1_ref, b1_ref, w2_ref, b2_ref, z_ref, zn_ref):
    # x / W1^T / W2^T already arrive in the MXU compute dtype (cast once in the wrapper);
    # accumulation is kept in f32 via preferred_element_type.
    x = x_ref[...]                                                     # (tile_b, H)

    h = jnp.dot(x, w1_ref[...], preferred_element_type=jnp.float32) + b1_ref[...]
    h = jnp.maximum(h, 0.0)                                            # ReLU (f32)

    z = jnp.dot(h.astype(w2_ref.dtype), w2_ref[...],
                preferred_element_type=jnp.float32) + b2_ref[...]
    z_ref[...] = z.astype(z_ref.dtype)                                 # projection-head output

    # L2 normalization for the cosine-similarity loss (rsqrt -> EUP slot, not VALU)
    sumsq = jnp.sum(z * z, axis=1, keepdims=True)
    zn_ref[...] = (z * lax.rsqrt(jnp.maximum(sumsq, 1e-12))).astype(zn_ref.dtype)


# ------------------------------------------------------------------------------------------
# Kernel 2: NT-Xent contrastive loss, lane-dense per-row losses (no cross-iteration carry)
# ------------------------------------------------------------------------------------------
def ntxent_kernel(inv_temp_ref, zrow_ref, zall_ref, loss_ref, *, tile_b):
    i = pl.program_id(0)
    inv_t = inv_temp_ref[0]                                            # scalar from SMEM

    # fold 1/temperature into this tile's rows once (tile_b x P multiply) instead of scaling
    # the (B x tile_b) similarity matrix every step.
    zr = (zrow_ref[...].astype(jnp.float32) * inv_t).astype(zrow_ref.dtype)   # (tile_b, P)
    za = zall_ref[...]                                                 # (B, P), grid-invariant
    n_total = za.shape[0]
    half = n_total // 2

    # sim[k, r] = <z_k, z_r / T>.  zall is the lhs in natural MXU orientation (no per-step
    # layout change of the invariant block); only the small row tile is the transposed rhs.
    sim = lax.dot_general(za, zr,
                          dimension_numbers=(((1,), (1,)), ((), ())),
                          preferred_element_type=jnp.float32)          # (B, tile_b)

    row = i * tile_b + lax.broadcasted_iota(jnp.int32, sim.shape, 1)   # this tile's global row
    other = lax.broadcasted_iota(jnp.int32, sim.shape, 0)              # index k over all rows
    not_self = (other != row).astype(jnp.float32)
    pos = row + half
    pos = jnp.where(pos >= n_total, pos - n_total, pos)                # positive = (i + B/2) % B
    pos_mask = (other == pos).astype(jnp.float32)

    # stable log-sum-exp over the non-self rows: subtract the finite column max, zero the self
    # entry AFTER the exp -- no -inf select, no NaN hazard.  All reductions are over axis 0,
    # so every result is already lane-dense (1, tile_b).
    smax = jnp.max(sim, axis=0, keepdims=True)                         # (1, tile_b)
    e = jnp.exp(sim - smax) * not_self
    denom = jnp.sum(e, axis=0, keepdims=True)
    pos_sim = jnp.sum(sim * pos_mask, axis=0, keepdims=True)

    # -log( exp(sim_pos) / sum_{k != i} exp(sim_ik) )
    loss_ref[...] = (smax + jnp.log(denom) - pos_sim).astype(loss_ref.dtype)


# ------------------------------------------------------------------------------------------
# Wrapper
# ------------------------------------------------------------------------------------------
def clnet_forward(pooled, w1, b1, w2, b2, *, temperature=0.5, tile_b=None,
                  compute_dtype=jnp.float32, vmem_limit_bytes=32 * 1024 * 1024):
    """CLNet forward starting from the pooled encoder output.

    pooled : (B, H) pooled BERT output.
    w1 : (M, H), b1 : (M,)   first projection-head layer  (PyTorch Linear layout: (out, in))
    w2 : (P, M), b2 : (P,)   output projection layer
    Returns (z (B, P) projection-head outputs, scalar NT-Xent contrastive loss).

    Production settings: compute_dtype=jnp.bfloat16 (f32 accumulation is kept), tile_b >= 128
    (v5e) / 256 (v6e, v7x) -- the default picks min(B, 256) -- and vmem_limit_bytes ~96 MiB on
    v5e/v6e (keep <= 32 MiB on v7x, which only has 64 MiB physical VMEM per TensorCore).
    """
    B, H = pooled.shape
    M = w1.shape[0]
    P = w2.shape[0]
    if tile_b is None:
        tile_b = min(B, 256)
    compute_dtype = jnp.dtype(compute_dtype)

    assert B % 2 == 0, "contrastive batch must hold pairs (rows i and i + B/2)"
    assert B % tile_b == 0, "pad the batch to a multiple of tile_b"  # TODO(synk): padding path
    if compute_dtype.itemsize < 4:
        assert tile_b % 16 == 0 or tile_b == B, \
            "sub-32-bit row tiles need >= 16 sublanes (or a single full-batch tile)"

    # materialize the loop-invariant operands ONCE: pre-transposed AND pre-cast in HBM.
    w1_t = jnp.asarray(w1).T.astype(compute_dtype)          # (H, M)
    w2_t = jnp.asarray(w2).T.astype(compute_dtype)          # (M, P)
    b1_r = jnp.asarray(b1, jnp.float32).reshape(1, M)
    b2_r = jnp.asarray(b2, jnp.float32).reshape(1, P)
    x = jnp.asarray(pooled).astype(compute_dtype)

    n_tiles = B // tile_b
    cparams = pltpu.CompilerParams(
        dimension_semantics=("parallel",),                  # no carry -> megacore-shardable
        vmem_limit_bytes=vmem_limit_bytes,
    )

    # ---- kernel 1: MLLinear projection head fused with L2 normalization -------------------
    z, zn = pl.pallas_call(
        projection_head_kernel,
        grid=(n_tiles,),
        in_specs=[
            pl.BlockSpec((tile_b, H), lambda i: (i, 0)),    # pooled embeddings (row tile)
            _invariant_spec((H, M)),                        # W1^T  (loop invariant, 1-buffered)
            _invariant_spec((1, M)),                        # b1
            _invariant_spec((M, P)),                        # W2^T
            _invariant_spec((1, P)),                        # b2
        ],
        out_specs=[
            pl.BlockSpec((tile_b, P), lambda i: (i, 0)),    # z   (lane-dense P)
            pl.BlockSpec((tile_b, P), lambda i: (i, 0)),    # zn  (stored in compute_dtype)
        ],
        out_shape=[
            jax.ShapeDtypeStruct((B, P), jnp.float32),
            jax.ShapeDtypeStruct((B, P), compute_dtype),
        ],
        compiler_params=cparams,
    )(x, w1_t, b1_r, w2_t, b2_r)

    # ---- kernel 2: NT-Xent loss, lane-dense per-row losses, mean-reduced in the wrapper ----
    # TODO(synk): at very large B the (B, P) zall block needs a second grid axis with an online
    #             logsumexp to stay inside v7x's 64 MiB VMEM; not needed at demo size.
    inv_temp = jnp.full((1,), 1.0 / temperature, jnp.float32)
    row_losses = pl.pallas_call(
        functools.partial(ntxent_kernel, tile_b=tile_b),
        grid=(n_tiles,),
        in_specs=[
            pl.BlockSpec(memory_space=pltpu.MemorySpace.SMEM),   # 1/temperature scalar in SMEM
            pl.BlockSpec((tile_b, P), lambda i: (i, 0)),         # this tile's normalized rows
            _invariant_spec((B, P)),                             # all normalized rows
        ],
        out_specs=pl.BlockSpec((1, tile_b), lambda i: (i, 0)),   # lane-dense loss row per tile
        out_shape=jax.ShapeDtypeStruct((n_tiles, tile_b), jnp.float32),
        compiler_params=cparams,
    )(inv_temp, zn, zn)

    loss = jnp.mean(row_losses)                                  # mean over all B rows
    return z, loss


# ------------------------------------------------------------------------------------------
# Pure-JAX reference (module semantics)
# ------------------------------------------------------------------------------------------
def _reference(pooled, w1, b1, w2, b2, temperature):
    hp = jax.lax.Precision.HIGHEST
    h = jax.nn.relu(jnp.dot(pooled, w1.T, precision=hp) + b1)
    z = jnp.dot(h, w2.T, precision=hp) + b2
    zn = z * lax.rsqrt(jnp.maximum(jnp.sum(z * z, axis=1, keepdims=True), 1e-12))
    sim = jnp.dot(zn, zn.T, precision=hp) / temperature
    n = z.shape[0]
    half = n // 2
    idx = jnp.arange(n)
    pos = (idx + half) % n
    neg_mask = ~jnp.eye(n, dtype=bool)
    lse = jax.nn.logsumexp(jnp.where(neg_mask, sim, -jnp.inf), axis=1)
    loss = jnp.mean(lse - sim[idx, pos])
    return z, loss


if __name__ == "__main__":
    # small but lane-dense shapes: batch of 8 pooled embeddings (4 positive pairs),
    # encoder hidden 128, projection-head hidden 128, projection dim 128.
    B, H, M, P = 8, 128, 128, 128
    temperature = 0.5

    key = jax.random.PRNGKey(0)
    k_x, k_w1, k_b1, k_w2, k_b2 = jax.random.split(key, 5)

    # stand-in for BERTEncoder(..., pooling=True) output
    pooled = jax.random.normal(k_x, (B, H), jnp.float32)

    lim1 = (6.0 / (H + M)) ** 0.5
    w1 = jax.random.uniform(k_w1, (M, H), jnp.float32, -lim1, lim1)   # PyTorch Linear layout
    b1 = jax.random.uniform(k_b1, (M,), jnp.float32, -lim1, lim1)
    lim2 = (6.0 / (M + P)) ** 0.5
    w2 = jax.random.uniform(k_w2, (P, M), jnp.float32, -lim2, lim2)
    b2 = jax.random.uniform(k_b2, (P,), jnp.float32, -lim2, lim2)

    z, loss = clnet_forward(pooled, w1, b1, w2, b2, temperature=temperature)
    jax.block_until_ready((z, loss))

    ref_z, ref_loss = _reference(pooled, w1, b1, w2, b2, temperature)
    # tolerance covers MXU f32-decomposition differences vs XLA's matmul lowering
    assert jnp.allclose(z, ref_z, atol=2e-2, rtol=1e-2), "projection output mismatch"
    assert jnp.allclose(loss, ref_loss, atol=2e-2, rtol=1e-2), "contrastive loss mismatch"

    print("KERNEL_OK")
</pallas_src>

<mosaic_0001>
module attributes {stable_mosaic.version = 11 : i64} {
  func.func @projection_head_kernel(%arg0: i32, %arg1: memref<8x128xf32, #tpu.memory_space<vmem>>, %arg2: memref<128x128xf32, #tpu.memory_space<vmem>>, %arg3: memref<1x128xf32, #tpu.memory_space<vmem>>, %arg4: memref<128x128xf32, #tpu.memory_space<vmem>>, %arg5: memref<1x128xf32, #tpu.memory_space<vmem>>, %arg6: memref<8x128xf32, #tpu.memory_space<vmem>>, %arg7: memref<8x128xf32, #tpu.memory_space<vmem>>) attributes {dimension_semantics = [#tpu.dimension_semantics<parallel>], iteration_bounds = array<i64: 1>, scalar_prefetch = 0 : i64, scratch_operands = 0 : i64, tpu.core_type = #tpu.core_type<tc>, window_params = [{transform_indices = @transform_0, window_bounds = array<i64: 8, 128>}, {pipeline_mode = #tpu.pipeline_mode<synchronous>, transform_indices = @transform_1, window_bounds = array<i64: 128, 128>}, {pipeline_mode = #tpu.pipeline_mode<synchronous>, transform_indices = @transform_2, window_bounds = array<i64: 1, 128>}, {pipeline_mode = #tpu.pipeline_mode<synchronous>, transform_indices = @transform_3, window_bounds = array<i64: 128, 128>}, {pipeline_mode = #tpu.pipeline_mode<synchronous>, transform_indices = @transform_4, window_bounds = array<i64: 1, 128>}, {transform_indices = @transform_5, window_bounds = array<i64: 8, 128>}, {transform_indices = @transform_6, window_bounds = array<i64: 8, 128>}]} {
    %c0 = arith.constant 0 : index
    %c0_0 = arith.constant 0 : index
    %0 = vector.load %arg1[%c0, %c0_0] : memref<8x128xf32, #tpu.memory_space<vmem>>, vector<8x128xf32>
    %c0_1 = arith.constant 0 : index
    %c0_2 = arith.constant 0 : index
    %1 = vector.load %arg2[%c0_1, %c0_2] : memref<128x128xf32, #tpu.memory_space<vmem>>, vector<128x128xf32>
    %cst = arith.constant dense<0.000000e+00> : vector<8x128xf32>
    %2 = tpu.matmul %0, %1, %cst {dimension_numbers = #tpu.dot_dimension_numbers<[1], [0], [0], [1], [0, 0, 1, 1], [], []>} : vector<8x128xf32>, vector<128x128xf32>, vector<8x128xf32> -> vector<8x128xf32>
    %c0_3 = arith.constant 0 : index
    %c0_4 = arith.constant 0 : index
    %3 = vector.load %arg3[%c0_3, %c0_4] : memref<1x128xf32, #tpu.memory_space<vmem>>, vector<1x128xf32>
    %4 = vector.broadcast %3 : vector<1x128xf32> to vector<8x128xf32>
    %5 = arith.addf %2, %4 : vector<8x128xf32>
    %cst_5 = arith.constant 0.000000e+00 : f32
    %6 = vector.broadcast %cst_5 : f32 to vector<8x128xf32>
    %7 = arith.maximumf %5, %6 : vector<8x128xf32>
    %c0_6 = arith.constant 0 : index
    %c0_7 = arith.constant 0 : index
    %8 = vector.load %arg4[%c0_6, %c0_7] : memref<128x128xf32, #tpu.memory_space<vmem>>, vector<128x128xf32>
    %cst_8 = arith.constant dense<0.000000e+00> : vector<8x128xf32>
    %9 = tpu.matmul %7, %8, %cst_8 {dimension_numbers = #tpu.dot_dimension_numbers<[1], [0], [0], [1], [0, 0, 1, 1], [], []>} : vector<8x128xf32>, vector<128x128xf32>, vector<8x128xf32> -> vector<8x128xf32>
    %c0_9 = arith.constant 0 : index
    %c0_10 = arith.constant 0 : index
    %10 = vector.load %arg5[%c0_9, %c0_10] : memref<1x128xf32, #tpu.memory_space<vmem>>, vector<1x128xf32>
    %11 = vector.broadcast %10 : vector<1x128xf32> to vector<8x128xf32>
    %12 = arith.addf %9, %11 : vector<8x128xf32>
    %c0_11 = arith.constant 0 : index
    %c0_12 = arith.constant 0 : index
    %13 = vector.load %arg6[%c0_11, %c0_12] : memref<8x128xf32, #tpu.memory_space<vmem>>, vector<8x128xf32>
    tpu.vector_store %arg6[%c0_11, %c0_12], %12 {strides = array<i32>} : memref<8x128xf32, #tpu.memory_space<vmem>>, vector<8x128xf32>,
    %14 = arith.mulf %12, %12 : vector<8x128xf32>
    %cst_13 = arith.constant dense<0.000000e+00> : vector<8xf32>
    %15 = vector.multi_reduction <add>, %14, %cst_13 [1] : vector<8x128xf32> to vector<8xf32>
    %16 = vector.shape_cast %15 : vector<8xf32> to vector<8x1xf32>
    %cst_14 = arith.constant 9.99999996E-13 : f32
    %17 = vector.broadcast %cst_14 : f32 to vector<8x1xf32>
    %18 = arith.maximumf %16, %17 : vector<8x1xf32>
    %19 = math.rsqrt %18 : vector<8x1xf32>
    %20 = vector.broadcast %19 : vector<8x1xf32> to vector<8x128xf32>
    %21 = arith.mulf %12, %20 : vector<8x128xf32>
    %c0_15 = arith.constant 0 : index
    %c0_16 = arith.constant 0 : index
    %22 = vector.load %arg7[%c0_15, %c0_16] : memref<8x128xf32, #tpu.memory_space<vmem>>, vector<8x128xf32>
    tpu.vector_store %arg7[%c0_15, %c0_16], %21 {strides = array<i32>} : memref<8x128xf32, #tpu.memory_space<vmem>>, vector<8x128xf32>,
    return
  }
  func.func @transform_0(%arg0: i32) -> (i32, i32) {
    %c0_i32 = arith.constant 0 : i32
    %c0_i32_0 = arith.constant 0 : i32
    return %arg0, %c0_i32 : i32, i32
  }
  func.func @transform_1(%arg0: i32) -> (i32, i32) {
    %c0_i32 = arith.constant 0 : i32
    %c0_i32_0 = arith.constant 0 : i32
    %c0_i32_1 = arith.constant 0 : i32
    return %c0_i32, %c0_i32_0 : i32, i32
  }
  func.func @transform_2(%arg0: i32) -> (i32, i32) {
    %c0_i32 = arith.constant 0 : i32
    %c0_i32_0 = arith.constant 0 : i32
    %c0_i32_1 = arith.constant 0 : i32
    return %c0_i32, %c0_i32_0 : i32, i32
  }
  func.func @transform_3(%arg0: i32) -> (i32, i32) {
    %c0_i32 = arith.constant 0 : i32
    %c0_i32_0 = arith.constant 0 : i32
    %c0_i32_1 = arith.constant 0 : i32
    return %c0_i32, %c0_i32_0 : i32, i32
  }
  func.func @transform_4(%arg0: i32) -> (i32, i32) {
    %c0_i32 = arith.constant 0 : i32
    %c0_i32_0 = arith.constant 0 : i32
    %c0_i32_1 = arith.constant 0 : i32
    return %c0_i32, %c0_i32_0 : i32, i32
  }
  func.func @transform_5(%arg0: i32) -> (i32, i32) {
    %c0_i32 = arith.constant 0 : i32
    %c0_i32_0 = arith.constant 0 : i32
    return %arg0, %c0_i32 : i32, i32
  }
  func.func @transform_6(%arg0: i32) -> (i32, i32) {
    %c0_i32 = arith.constant 0 : i32
    %c0_i32_0 = arith.constant 0 : i32
    return %arg0, %c0_i32 : i32, i32
  }
}

</mosaic_0001>

<bundles_post_ra>
// kernel: tpu_custom_call.1
= control target key start
LH: loop header
LB: loop body
LE: loop exit
PB: predicated region body
PF: predicated region fallthrough
CT: control target
= control target key end

     0   :  { %12 = vsyncpa [#allocation3], 0  ;;  %s706_s0 = inlined_call_operand.hbm [shape: f32[8,128], index: 0, kind: input, shape index: {}]   ;;  %s707_s1 = inlined_call_operand.hbm [shape: f32[128,128], index: 1, kind: input, shape index: {}]   ;;  %s708_s2 = inlined_call_operand.vmem [shape: f32[1,128], index: 2, kind: input, shape index: {}]   ;;  %s709_s3 = inlined_call_operand.hbm [shape: f32[128,128], index: 3, kind: input, shape index: {}]   ;;  %s710_s4 = inlined_call_operand.vmem [shape: f32[1,128], index: 4, kind: input, shape index: {}]   ;;  %s711_s5 = inlined_call_operand.hbm [shape: f32[8,128], index: 5, kind: output, shape index: {0}]   ;;  %s712_s6 = inlined_call_operand.hbm [shape: f32[8,128], index: 6, kind: output, shape index: {1}]  }
   0x1   :  { %13 = vsyncpa [#allocation6], 0 }
   0x2   :  { %14 = vsyncpa [#allocation4], 0 }
   0x3   :  { %15 = vsyncpa [#allocation10], 0  ;;  %s573_s21 = smov [#allocation5]   ;;  %s455_s25 = scalar_lea.hbm %s707_s1, 2048 }
   0x4   :  { %s31_s22 = sshll.u32 %s573_s21, 4  ;;  %p456_p0 = scmp.ne.s32.totalorder %s707_s1, %s455_s25  ;;  %s32_s22 = int_to_ptr.vmem [resolvable:$true] %s31_s22 }
   0x5   :  { %p459_p1 = scmp.lt.u32.totalorder %s455_s25, %s707_s1 }
   0x7   :  { %p461_p2 = pnand %p459_p1, %p456_p0 }
   0x9   :  { %464 = shalt.err (!%p461_p2)
}
   0xa   :  { %s465_s30 = scalar_lea.vmem %s32_s22, 2048  ;;  %p470_p4 = scmp.lt.s32.totalorder %s32_s22, %s32_s22 }
   0xb   :  { %p466_p3 = scmp.ne.s32.totalorder %s32_s22, %s465_s30  ;;  %p471_p5 = scmp.lt.s32.totalorder %s465_s30, %s465_s30 }
   0xd   :  { %p472_p6 = por %p471_p5, %p470_p4 }
   0xf   :  { %p473_p7 = pnand %p472_p6, %p466_p3 }
  0x11   :  { %476 = shalt.err (!%p473_p7)
}
  0x12   :  { %s574_s7 = smov 128   ;;  %s575_s8 = smov 8  }
  0x13   :  { %37 = dma.hbm_to_vmem [thread:$0]  %s707_s1, 2048, %s32_s22, [#allocation6], %s574_s7, %s574_s7, %s575_s8  }
  0x14   :  { %s576_s11 = smov [#allocation2]   ;;  %s577_s13 = smov [#allocation7]  }
  0x15   :  { %s22_s12 = sshll.u32 %s576_s11, 4  ;;  %s45_s14 = sshll.u32 %s577_s13, 4  ;;  %s23_s12 = int_to_ptr.vmem [resolvable:$true] %s22_s12  ;;  %s46_s14 = int_to_ptr.vmem [resolvable:$true] %s45_s14 }
  0x16   :  { %s477_s17 = scalar_lea.hbm %s706_s0, 128 }
  0x17   :  { %p478_p8 = scmp.ne.s32.totalorder %s706_s0, %s477_s17  ;;  %p481_p9 = scmp.lt.u32.totalorder %s477_s17, %s706_s0 }
  0x19   :  { %p483_p10 = pnand %p481_p9, %p478_p8 }
  0x1b   :  { %486 = shalt.err (!%p483_p10)
}
  0x1c   :  { %s487_s1 = scalar_lea.vmem %s23_s12, 128  ;;  %p492_p12 = scmp.lt.s32.totalorder %s23_s12, %s23_s12 }
  0x1d   :  { %p488_p11 = scmp.ne.s32.totalorder %s23_s12, %s487_s1  ;;  %p493_p13 = scmp.lt.s32.totalorder %s487_s1, %s487_s1 }
  0x1f   :  { %p494_p0 = por %p493_p13, %p492_p12 }
  0x21   :  { %p495_p1 = pnand %p494_p0, %p488_p11 }
  0x23   :  { %498 = shalt.err (!%p495_p1)
}
  0x24   :  { %25 = dma.hbm_to_vmem [thread:$0]  %s706_s0, 128, %s23_s12, [#allocation3]  }
  0x25   :  { %s499_s26 = scalar_lea.hbm %s709_s3, 2048 }
  0x26   :  { %p500_p2 = scmp.ne.s32.totalorder %s709_s3, %s499_s26  ;;  %p503_p3 = scmp.lt.u32.totalorder %s499_s26, %s709_s3 }
  0x28   :  { %p505_p4 = pnand %p503_p3, %p500_p2 }
  0x2a   :  { %508 = shalt.err (!%p505_p4)
}
  0x2b   :  { %s509_s9 = scalar_lea.vmem %s46_s14, 2048  ;;  %p514_p6 = scmp.lt.s32.totalorder %s46_s14, %s46_s14 }
  0x2c   :  { %p510_p5 = scmp.ne.s32.totalorder %s46_s14, %s509_s9  ;;  %p515_p7 = scmp.lt.s32.totalorder %s509_s9, %s509_s9 }
  0x2e   :  { %p516_p8 = por %p515_p7, %p514_p6 }
  0x30   :  { %p517_p9 = pnand %p516_p8, %p510_p5 }
  0x32   :  { %520 = shalt.err (!%p517_p9)
}
  0x33   :  { %51 = dma.hbm_to_vmem [thread:$0]  %s709_s3, 2048, %s46_s14, [#allocation6], %s574_s7, %s574_s7, %s575_s8  }
  0x34   :  { %565 = dma.done.wait [#allocation3], 128  }
  0x35   :  { %566 = vsyncadd [#allocation3], 4294967168 }
  0x36   :  { %567 = dma.done.wait [#allocation6], 4096  }
  0x37   :  { %568 = vsyncadd [#allocation6], 4294963200  ;;  %v578_v0 = vmov 0.0|0.0   ;;  %vm579_vm0 = vmmov 0   ;;  %v580_v1 = vmov 0.0   ;;  %v64_v2 = vld [vmem:[#allocation5] sm:$0xff] }
  0x38   :  { %395 = vmatprep.subr.bf16.mxu0 %v578_v0  ;;  %357 = vmatprep.mubr.msk.f32.mxu0 %vm579_vm0, %v580_v1  ;;  %v65_v3 = vld [vmem:[#allocation5 + $0x8] sm:$0xff]  ;;  %v66_v4 = vld [vmem:[#allocation5 + $0x10] sm:$0xff]  ;;  %v67_v6 = vld [vmem:[#allocation5 + $0x18] sm:$0xff]  ;;  %s581_s12 = smov [#allocation8]  }
  0x39   :  { %419 = vmatprep.subr.bf16.mxu1 %v578_v0  ;;  %392 = vmatprep.mubr.msk.f32.mxu1 %vm579_vm0, %v580_v1  ;;  %v396_v5 = vpack.c.bf16 %v65_v3, %v64_v2  ;;  %v399_v7 = vpack.c.bf16 %v67_v6, %v66_v4  ;;  %v68_v8 = vld [vmem:[#allocation5 + $0x20] sm:$0xff]  ;;  %v69_v9 = vld [vmem:[#allocation5 + $0x28] sm:$0xff]  ;;  %v160_v12 = vld [vmem:[#allocation7 + $0x10] sm:$0xff]  ;;  %s265_s13 = sshll.u32 %s581_s12, 4  ;;  %s266_s13 = int_to_ptr.vmem [resolvable:$true] %s265_s13 }
  0x3a   :  { %v158_v10 = vld [vmem:[#allocation7] sm:$0xff]  ;;  %v159_v11 = vld [vmem:[#allocation7 + $0x8] sm:$0xff]  ;;  %v161_v13 = vld [vmem:[#allocation7 + $0x18] sm:$0xff]  ;;  %v402_v14 = vpack.c.bf16 %v69_v9, %v68_v8  ;;  %s521_s14 = scalar_lea.vmem %s266_s13, 128  ;;  %p526_p11 = scmp.lt.s32.totalorder %s266_s13, %s266_s13 }
  0x3b   :  { %397 = vmatpush3.bf16.msra.mxu0 %v396_v5  ;;  %v420_v15 = vpack.c.bf16 %v159_v11, %v158_v10  ;;  %v70_v16 = vld [vmem:[#allocation5 + $0x30] sm:$0xff]  ;;  %v71_v17 = vld [vmem:[#allocation5 + $0x38] sm:$0xff]  ;;  %v423_v18 = vpack.c.bf16 %v161_v13, %v160_v12  ;;  %v162_v19 = vld [vmem:[#allocation7 + $0x20] sm:$0xff]  ;;  %p522_p10 = scmp.ne.s32.totalorder %s266_s13, %s521_s14  ;;  %p527_p12 = scmp.lt.s32.totalorder %s521_s14, %s521_s14 }
  0x3c   :  { %398 = vmatprep.subr.bf16.mxu0 %v578_v0  ;;  %v163_v20 = vld [vmem:[#allocation7 + $0x28] sm:$0xff]  ;;  %v405_v21 = vpack.c.bf16 %v71_v17, %v70_v16  ;;  %v72_v22 = vld [vmem:[#allocation5 + $0x40] sm:$0xff]  ;;  %v164_v25 = vld [vmem:[#allocation7 + $0x30] sm:$0xff] }
  0x3d   :  { %421 = vmatpush3.bf16.msra.mxu1 %v420_v15  ;;  %v73_v23 = vld [vmem:[#allocation5 + $0x48] sm:$0xff]  ;;  %v426_v24 = vpack.c.bf16 %v163_v20, %v162_v19  ;;  %v165_v26 = vld [vmem:[#allocation7 + $0x38] sm:$0xff]  ;;  %v74_v28 = vld [vmem:[#allocation5 + $0x50] sm:$0xff]  ;;  %p528_p13 = por %p527_p12, %p526_p11 }
  0x3e   :  { %422 = vmatprep.subr.bf16.mxu1 %v578_v0  ;;  %v408_v27 = vpack.c.bf16 %v73_v23, %v72_v22  ;;  %v75_v29 = vld [vmem:[#allocation5 + $0x58] sm:$0xff]  ;;  %v429_v30 = vpack.c.bf16 %v165_v26, %v164_v25  ;;  %v166_v31 = vld [vmem:[#allocation7 + $0x40] sm:$0xff]  ;;  %v167_v32 = vld [vmem:[#allocation7 + $0x48] sm:$0xff] }
  0x3f   :  { %400 = vmatpush3.bf16.msra.mxu0 %v399_v7  ;;  %v411_v33 = vpack.c.bf16 %v75_v29, %v74_v28  ;;  %v76_v34 = vld [vmem:[#allocation5 + $0x60] sm:$0xff]  ;;  %v77_v35 = vld [vmem:[#allocation5 + $0x68] sm:$0xff]  ;;  %v432_v36 = vpack.c.bf16 %v167_v32, %v166_v31  ;;  %v168_v37 = vld [vmem:[#allocation7 + $0x50] sm:$0xff]  ;;  %p529_p0 = pnand %p528_p13, %p522_p10 }
  0x40   :  { %401 = vmatprep.subr.bf16.mxu0 %v578_v0  ;;  %v169_v38 = vld [vmem:[#allocation7 + $0x58] sm:$0xff]  ;;  %v414_v39 = vpack.c.bf16 %v77_v35, %v76_v34  ;;  %v78_v40 = vld [vmem:[#allocation5 + $0x70] sm:$0xff]  ;;  %v170_v43 = vld [vmem:[#allocation7 + $0x60] sm:$0xff] }
  0x41   :  { %424 = vmatpush3.bf16.msra.mxu1 %v423_v18  ;;  %v79_v41 = vld [vmem:[#allocation5 + $0x78] sm:$0xff]  ;;  %v435_v42 = vpack.c.bf16 %v169_v38, %v168_v37  ;;  %v171_v44 = vld [vmem:[#allocation7 + $0x68] sm:$0xff]  ;;  %v172_v48 = vld [vmem:[#allocation7 + $0x70] sm:$0xff] }
  0x42   :  { %425 = vmatprep.subr.bf16.mxu1 %v578_v0  ;;  %v417_v45 = vpack.c.bf16 %v79_v41, %v78_v40  ;;  %v438_v46 = vpack.c.bf16 %v171_v44, %v170_v43  ;;  %v63_v47 = vld [vmem:[#allocation2] sm:$0xff] }
  0x43   :  { %403 = vmatpush3.bf16.msra.mxu0 %v402_v14  ;;  %v173_v49 = vld [vmem:[#allocation7 + $0x78] sm:$0xff] }
  0x44   :  { %404 = vmatprep.subr.bf16.mxu0 %v578_v0  ;;  %v441_v50 = vpack.c.bf16 %v173_v49, %v172_v48  ;;  %v289_v51 = vld [vmem:[%s708_s2] ss:$0 sm:$0xff] }
  0x45   :  { %427 = vmatpush3.bf16.msra.mxu1 %v426_v24  ;;  %v290_v56 = vld [vmem:[%s710_s4] ss:$0 sm:$0xff] }
  0x46   :  { %428 = vmatprep.subr.bf16.mxu1 %v578_v0 }
  0x47   :  { %406 = vmatpush3.bf16.msra.mxu0 %v405_v21 }
  0x48   :  { %407 = vmatprep.subr.bf16.mxu0 %v578_v0 }
  0x49   :  { %430 = vmatpush3.bf16.msra.mxu1 %v429_v30 }
  0x4a   :  { %431 = vmatprep.subr.bf16.mxu1 %v578_v0 }
  0x4b   :  { %409 = vmatpush3.bf16.msra.mxu0 %v408_v27 }
  0x4c   :  { %410 = vmatprep.subr.bf16.mxu0 %v578_v0 }
  0x4d   :  { %433 = vmatpush3.bf16.msra.mxu1 %v432_v36 }
  0x4e   :  { %434 = vmatprep.subr.bf16.mxu1 %v578_v0 }
  0x4f   :  { %412 = vmatpush3.bf16.msra.mxu0 %v411_v33 }
  0x50   :  { %413 = vmatprep.subr.bf16.mxu0 %v578_v0 }
  0x51   :  { %436 = vmatpush3.bf16.msra.mxu1 %v435_v42 }
  0x52   :  { %437 = vmatprep.subr.bf16.mxu1 %v578_v0 }
  0x53   :  { %415 = vmatpush3.bf16.msra.mxu0 %v414_v39 }
  0x54   :  { %416 = vmatprep.subr.bf16.mxu0 %v578_v0 }
  0x55   :  { %439 = vmatpush3.bf16.msra.mxu1 %v438_v46 }
  0x56   :  { %440 = vmatprep.subr.bf16.mxu1 %v578_v0 }
  0x57   :  { %418 = vmatpush3.bf16.msra.mxu0 %v417_v45 }
  0x59   :  { %442 = vmatpush3.bf16.msra.mxu1 %v441_v50 }
  0x5a   :  { %358 = vmatmul.mubr.f32.vlgmr.msra.gmra.mrb[0].mxu0 %v63_v47 }
 0x12d   :  { %v153_v52 = vpop.f32.mrb[0].mxu0 }
 0x12e   :  { %v154_v53 = vadd.f32 %v289_v51, %v153_v52  ;;  %v359_v54 = vpop.f32.mrb[1].mxu0 }
 0x130   :  { %v157_v55 = vmax.f32 %v154_v53, 0.0 }
 0x132   :  { %393 = vmatmul.mubr.f32.vlgmr.msra.gmra.mrb[0].mxu1 %v157_v55 }
 0x205   :  { %v247_v57 = vpop.f32.mrb[0].mxu1 }
 0x206   :  { %v248_v58 = vadd.f32 %v290_v56, %v247_v57  ;;  %v394_v59 = vpop.f32.mrb[1].mxu1 }
 0x208   :  { %251 = vst [vmem:[#allocation8] sm:$0xff] %v248_v58  ;;  %v252_v60 = vmul.f32 %v248_v58, %v248_v58 }
 0x20a   :  { %253 = vadd.xlane.f32.xlu0 %v252_v60 }
 0x20b   :  { %532 = shalt.err (!%p529_p0)
}
 0x20c   :  { %s533_s4 = scalar_lea.hbm %s711_s5, 128 }
 0x20d   :  { %p534_p1 = scmp.ne.s32.totalorder %s711_s5, %s533_s4  ;;  %p537_p2 = scmp.lt.u32.totalorder %s533_s4, %s711_s5 }
 0x20f   :  { %p539_p3 = pnand %p537_p2, %p534_p1 }
 0x211   :  { %542 = shalt.err (!%p539_p3)
}
 0x212   :  { %268 = dma.vmem_to_hbm [thread:$0]  %s266_s13, 128, %s711_s5, [#allocation4]  }
 0x213   :  { %s582_s1 = smov [#allocation9]  }
 0x214   :  { %s275_s22 = sshll.u32 %s582_s1, 4  ;;  %s276_s22 = int_to_ptr.vmem [resolvable:$true] %s275_s22 }
 0x215   :  { %s543_s23 = scalar_lea.vmem %s276_s22, 128  ;;  %p548_p5 = scmp.lt.s32.totalorder %s276_s22, %s276_s22 }
 0x216   :  { %p544_p4 = scmp.ne.s32.totalorder %s276_s22, %s543_s23  ;;  %p549_p6 = scmp.lt.s32.totalorder %s543_s23, %s543_s23 }
 0x218   :  { %p550_p7 = por %p549_p6, %p548_p5 }
 0x21a   :  { %p551_p8 = pnand %p550_p7, %p544_p4 }
 0x297   :  { %v254_v61 = vpop.xlane.xlu0 %253 }
 0x298   :  { %v255_v62 = vmax.f32 %v254_v61, 1e-12 }
 0x29a   :  { %453 = vrsqrt.f32 %v255_v62 }
 0x2a4   :  { %v454_v63 = vpop.eup %453 }
 0x2a5   :  { %v257_v0 = vmul.f32 %v454_v63, %v248_v58 }
 0x2a7   :  { %258 = vst [vmem:[#allocation9] sm:$0xff] %v257_v0 }
 0x2a8   :  { %554 = shalt.err (!%p551_p8)
}
 0x2a9   :  { %s555_s5 = scalar_lea.hbm %s712_s6, 128 }
 0x2aa   :  { %p556_p9 = scmp.ne.s32.totalorder %s712_s6, %s555_s5  ;;  %p559_p10 = scmp.lt.u32.totalorder %s555_s5, %s712_s6 }
 0x2ac   :  { %p561_p11 = pnand %p559_p10, %p556_p9 }
 0x2ae   :  { %564 = shalt.err (!%p561_p11)
}
 0x2af   :  { %278 = dma.vmem_to_hbm [thread:$0]  %s276_s22, 128, %s712_s6, [#allocation10]  }
 0x2b0   :  { %569 = dma.done.wait [#allocation4], 128  }
 0x2b1   :  { %570 = vsyncadd [#allocation4], 4294967168 }
 0x2b2   :  { %571 = dma.done.wait [#allocation10], 128  }
 0x2b3   :  { %572 = vsyncadd [#allocation10], 4294967168 }
 0x2b4   :  { %285 = vsyncpa [#allocation3], 1 }
 0x2b5   :  { %286 = vsyncpa [#allocation6], 1 }
 0x2b6   :  { %287 = vsyncpa [#allocation4], 1 }
 0x2b7   :  { %288 = vsyncpa [#allocation10], 1 }

</bundles_post_ra>
